<compile_context>
chip_gen: v7x
topology: tpu7x:2x2x1
jax: 0.10.0
libtpu: 0.0.40
codegen_flags: <defaults>
</compile_context>

<pallas_src>
import jax
import jax.numpy as jnp
from jax.experimental import pallas as pl
from jax.experimental.pallas import tpu as pltpu


def _kernel(x_ref, w_ref, bconv_ref, ph_ref, wcls_ref, bcls_ref, out_ref):
    # x_ref    : (tb*Hp, Kpad)  bf16  ky-tripled padded images; row = (img, padded_row)
    # w_ref    : (Kpad, W*F)    bf16  block-Toeplitz conv weight (ky, kx, C folded into K)
    # bconv_ref: (1, W*F)       f32   conv bias tiled over w
    # ph_ref   : (tb, tb*Hp)    bf16  row-pooling matrix, 1/(H*W) on valid rows, else 0
    # wcls_ref : (W*F, NCpad)   bf16  classifier weight tiled over w, NC zero-padded to 128
    # bcls_ref : (1, NCpad)     f32
    # out_ref  : (tb, NCpad)    f32   lane-dense logits slab
    conv = jnp.dot(x_ref[...], w_ref[...], preferred_element_type=jnp.float32)
    conv = jnp.maximum(conv + bconv_ref[...], 0.0).astype(jnp.bfloat16)      # bias + ReLU
    # masked global-average-pool over rows (1/HW folded into ph) -> (tb, W*F)
    pooled = jnp.dot(ph_ref[...], conv, preferred_element_type=jnp.float32)
    # column pooling + classifier fused into one matmul (wcls tiled over w) -> (tb, NCpad)
    logits = jnp.dot(pooled.astype(jnp.bfloat16), wcls_ref[...],
                     preferred_element_type=jnp.float32) + bcls_ref[...]
    out_ref[...] = logits


def classifier_forward(x_nchw, wconv, bconv, wcls, bcls, *, tb=32):
    """x_nchw: [B, C, H, W] float32. Returns logits [B, NC]."""
    B, C, H, W = x_nchw.shape
    CK, F = wconv.shape
    assert CK == 9 * C
    NC = wcls.shape[1]
    Hp, Wp = H + 2, W + 2
    WpC = Wp * C
    WF = W * F
    NCpad = max(128, ((NC + 127) // 128) * 128)
    K = 3 * WpC
    Kpad = max(128, ((K + 127) // 128) * 128)

    # Batch tile: multiple of 8, clamped so a tiny batch does not compute mostly padding.
    tb = max(8, min(tb, -(-B // 8) * 8))
    Bp = -(-B // tb) * tb                        # batch padded to a multiple of tb
    LRB = tb * Hp                                # rows per block (8-aligned: tb % 8 == 0)

    # ---------------- one-time layout / weight prep (glue, not the hot path) -------------
    x = x_nchw.astype(jnp.float32)
    if Bp != B:
        x = jnp.concatenate([x, jnp.zeros((Bp - B, C, H, W), jnp.float32)], axis=0)
    x_nhwc = jnp.transpose(x, (0, 2, 3, 1))                       # [Bp, H, W, C]
    xp = jnp.pad(x_nhwc, ((0, 0), (1, 1), (1, 1), (0, 0)))        # [Bp, Hp, Wp, C]

    # ky-tripled slab: X3[i, h, ky*WpC + wp*C + c] = xp[i, h+ky, wp, c] for h < H, else 0.
    parts = [jnp.pad(xp[:, ky:ky + H], ((0, 0), (0, Hp - H), (0, 0), (0, 0)))
             .reshape(Bp, Hp, WpC) for ky in range(3)]
    x3 = jnp.concatenate(parts, axis=-1)                          # [Bp, Hp, 3*WpC]
    x3 = jnp.pad(x3, ((0, 0), (0, 0), (0, Kpad - K)))             # lane/K pad to 128-mult
    x3 = x3.reshape(Bp * Hp, Kpad).astype(jnp.bfloat16)           # rows=(img,hp)

    # block-Toeplitz conv weight: w_big[ky*WpC + wp*C + c, w*F + f] = wconv[ky, wp-w, c, f]
    # for 0 <= wp - w < 3, else 0  (ky, kx taps and channel contraction live in the weight).
    w4 = wconv.reshape(3, 3, C, F).astype(jnp.float32)
    blocks = [jnp.pad(w4, ((0, 0), (w, Wp - w - 3), (0, 0), (0, 0))) for w in range(W)]
    wky = jnp.stack(blocks, axis=3).reshape(3 * WpC, WF)          # (3*Wp*C, W*F)
    w_big = jnp.pad(wky, ((0, Kpad - K), (0, 0))).astype(jnp.bfloat16)   # (Kpad, W*F)

    bconv_big = jnp.tile(bconv.reshape(1, F).astype(jnp.float32), (1, W))      # (1, W*F)

    # row-pooling matrix: selects the H valid padded-rows of each image, scaled by 1/(H*W)
    r = jnp.arange(LRB)
    img_of_r = r // Hp
    h_of_r = r % Hp
    ph = ((img_of_r[None, :] == jnp.arange(tb)[:, None]) & (h_of_r[None, :] < H))
    ph = (ph.astype(jnp.float32) / float(H * W)).astype(jnp.bfloat16)          # (tb, tb*Hp)

    # classifier weight tiled over w (finishes the spatial mean), NC padded to lane width
    wcls_pad = jnp.pad(wcls.astype(jnp.float32), ((0, 0), (0, NCpad - NC)))
    wcls_big = jnp.tile(wcls_pad, (W, 1)).astype(jnp.bfloat16)                 # (W*F, NCpad)
    bcls_pad = jnp.pad(bcls.reshape(1, NC).astype(jnp.float32),
                       ((0, 0), (0, NCpad - NC)))                              # (1, NCpad)

    # ---------------- fused Pallas kernel -------------------------------------------------
    steps = Bp // tb
    flops = steps * (2 * LRB * Kpad * WF + 2 * tb * LRB * WF + 2 * tb * WF * NCpad)
    bytes_accessed = (Bp * Hp * Kpad * 2                      # input slab (bf16)
                      + Kpad * WF * 2 + WF * 4                # conv weight + bias
                      + tb * LRB * 2                          # pooling matrix
                      + WF * NCpad * 2 + NCpad * 4            # classifier weight + bias
                      + Bp * NCpad * 4)                       # output
    out = pl.pallas_call(
        _kernel,
        out_shape=jax.ShapeDtypeStruct((Bp, NCpad), jnp.float32),
        grid_spec=pltpu.PrefetchScalarGridSpec(
            num_scalar_prefetch=0,
            grid=(steps,),
            in_specs=[
                pl.BlockSpec((LRB, Kpad), lambda b: (b, 0)),     # ky-tripled image slab
                pl.BlockSpec((Kpad, WF), lambda b: (0, 0)),      # resident conv weight
                pl.BlockSpec((1, WF), lambda b: (0, 0)),
                pl.BlockSpec((tb, LRB), lambda b: (0, 0)),
                pl.BlockSpec((WF, NCpad), lambda b: (0, 0)),
                pl.BlockSpec((1, NCpad), lambda b: (0, 0)),
            ],
            out_specs=pl.BlockSpec((tb, NCpad), lambda b: (b, 0)),  # lane-dense logits
        ),
        compiler_params=pltpu.CompilerParams(
            dimension_semantics=("parallel",)),
        cost_estimate=pl.CostEstimate(flops=int(flops), transcendentals=0,
                                      bytes_accessed=int(bytes_accessed)),
    )(x3, w_big, bconv_big, ph, wcls_big, bcls_pad)
    return out[:B, :NC]


def _reference_forward(x_nchw, wconv, bconv, wcls, bcls):
    """Pure-JAX f32 reference (same math) for correctness checking."""
    B, C, H, W = x_nchw.shape
    x_nhwc = jnp.transpose(x_nchw, (0, 2, 3, 1))
    xp = jnp.pad(x_nhwc, ((0, 0), (1, 1), (1, 1), (0, 0)))
    patch_list = [xp[:, i:i + H, j:j + W, :] for i in range(3) for j in range(3)]
    patches = jnp.stack(patch_list, axis=3).reshape(B, H * W, 9 * C)
    conv = jnp.einsum('bpk,kf->bpf', patches, wconv) + bconv        # [B,HW,F]
    conv = jnp.maximum(conv, 0.0)
    feat = jnp.mean(conv, axis=1)                                   # [B,F]
    return feat @ wcls + bcls                                       # [B,NC]


if __name__ == "__main__":
    B, C, H, W = 2, 4, 16, 16
    FEATURE_SIZE = 32            # feature_extractor.feature_size
    NUM_CLASSES = 10

    key = jax.random.PRNGKey(0)
    kx, kwc, kbc, kwl, kbl = jax.random.split(key, 5)

    x = jax.random.normal(kx, (B, C, H, W), dtype=jnp.float32)

    # feature-extractor stand-in params: conv3x3 C -> FEATURE_SIZE
    wconv = jax.random.normal(kwc, (9 * C, FEATURE_SIZE), jnp.float32) * 0.1
    bconv = jax.random.normal(kbc, (1, FEATURE_SIZE), jnp.float32) * 0.1

    # classifier = nn.Linear(feature_size, num_classes): W is [NC, F] in torch,
    # we store its transpose [F, NC] for the kernel's matmul.
    wcls_t = jax.random.normal(kwl, (NUM_CLASSES, FEATURE_SIZE), jnp.float32) * 0.1
    wcls = jnp.transpose(wcls_t)                       # [F, NC]
    bcls = jax.random.normal(kbl, (1, NUM_CLASSES), jnp.float32) * 0.1

    logits = classifier_forward(x, wconv, bconv, wcls, bcls)
    logits = jax.block_until_ready(logits)

    ref = _reference_forward(x, wconv, bconv, wcls, bcls)
    assert logits.shape == (B, NUM_CLASSES)
    # bf16 matmul inputs with f32 accumulation -> loosen tolerance vs the f32 reference.
    assert jnp.allclose(logits, ref, atol=2e-2, rtol=2e-2), "mismatch vs reference"

    print("KERNEL_OK")
</pallas_src>

<mosaic_0001>
module attributes {stable_mosaic.version = 11 : i64} {
  func.func @_kernel(%arg0: i32, %arg1: memref<144x256xbf16, #tpu.memory_space<vmem>>, %arg2: memref<256x512xbf16, #tpu.memory_space<vmem>>, %arg3: memref<1x512xf32, #tpu.memory_space<vmem>>, %arg4: memref<8x144xbf16, #tpu.memory_space<vmem>>, %arg5: memref<512x128xbf16, #tpu.memory_space<vmem>>, %arg6: memref<1x128xf32, #tpu.memory_space<vmem>>, %arg7: memref<8x128xf32, #tpu.memory_space<vmem>>) attributes {dimension_semantics = [#tpu.dimension_semantics<parallel>], iteration_bounds = array<i64: 1>, scalar_prefetch = 0 : i64, scratch_operands = 0 : i64, tpu.core_type = #tpu.core_type<tc>, window_params = [{transform_indices = @transform_0, window_bounds = array<i64: 144, 256>}, {pipeline_mode = #tpu.pipeline_mode<synchronous>, transform_indices = @transform_1, window_bounds = array<i64: 256, 512>}, {pipeline_mode = #tpu.pipeline_mode<synchronous>, transform_indices = @transform_2, window_bounds = array<i64: 1, 512>}, {pipeline_mode = #tpu.pipeline_mode<synchronous>, transform_indices = @transform_3, window_bounds = array<i64: 8, 144>}, {pipeline_mode = #tpu.pipeline_mode<synchronous>, transform_indices = @transform_4, window_bounds = array<i64: 512, 128>}, {pipeline_mode = #tpu.pipeline_mode<synchronous>, transform_indices = @transform_5, window_bounds = array<i64: 1, 128>}, {transform_indices = @transform_6, window_bounds = array<i64: 8, 128>}]} {
    %c0 = arith.constant 0 : index
    %c0_0 = arith.constant 0 : index
    %0 = vector.load %arg1[%c0, %c0_0] : memref<144x256xbf16, #tpu.memory_space<vmem>>, vector<144x256xbf16>
    %c0_1 = arith.constant 0 : index
    %c0_2 = arith.constant 0 : index
    %1 = vector.load %arg2[%c0_1, %c0_2] : memref<256x512xbf16, #tpu.memory_space<vmem>>, vector<256x512xbf16>
    %cst = arith.constant dense<0.000000e+00> : vector<144x512xf32>
    %2 = tpu.matmul %0, %1, %cst {dimension_numbers = #tpu.dot_dimension_numbers<[1], [0], [0], [1], [0, 0, 1, 1], [], []>} : vector<144x256xbf16>, vector<256x512xbf16>, vector<144x512xf32> -> vector<144x512xf32>
    %c0_3 = arith.constant 0 : index
    %c0_4 = arith.constant 0 : index
    %3 = vector.load %arg3[%c0_3, %c0_4] : memref<1x512xf32, #tpu.memory_space<vmem>>, vector<1x512xf32>
    %4 = vector.broadcast %3 : vector<1x512xf32> to vector<144x512xf32>
    %5 = arith.addf %2, %4 : vector<144x512xf32>
    %cst_5 = arith.constant 0.000000e+00 : f32
    %6 = vector.broadcast %cst_5 : f32 to vector<144x512xf32>
    %7 = arith.maximumf %5, %6 : vector<144x512xf32>
    %8 = arith.truncf %7 : vector<144x512xf32> to vector<144x512xbf16>
    %c0_6 = arith.constant 0 : index
    %c0_7 = arith.constant 0 : index
    %9 = vector.load %arg4[%c0_6, %c0_7] : memref<8x144xbf16, #tpu.memory_space<vmem>>, vector<8x144xbf16>
    %cst_8 = arith.constant dense<0.000000e+00> : vector<8x512xf32>
    %10 = tpu.matmul %9, %8, %cst_8 {dimension_numbers = #tpu.dot_dimension_numbers<[1], [0], [0], [1], [0, 0, 1, 1], [], []>} : vector<8x144xbf16>, vector<144x512xbf16>, vector<8x512xf32> -> vector<8x512xf32>
    %11 = arith.truncf %10 : vector<8x512xf32> to vector<8x512xbf16>
    %c0_9 = arith.constant 0 : index
    %c0_10 = arith.constant 0 : index
    %12 = vector.load %arg5[%c0_9, %c0_10] : memref<512x128xbf16, #tpu.memory_space<vmem>>, vector<512x128xbf16>
    %cst_11 = arith.constant dense<0.000000e+00> : vector<8x128xf32>
    %13 = tpu.matmul %11, %12, %cst_11 {dimension_numbers = #tpu.dot_dimension_numbers<[1], [0], [0], [1], [0, 0, 1, 1], [], []>} : vector<8x512xbf16>, vector<512x128xbf16>, vector<8x128xf32> -> vector<8x128xf32>
    %c0_12 = arith.constant 0 : index
    %c0_13 = arith.constant 0 : index
    %14 = vector.load %arg6[%c0_12, %c0_13] : memref<1x128xf32, #tpu.memory_space<vmem>>, vector<1x128xf32>
    %15 = vector.broadcast %14 : vector<1x128xf32> to vector<8x128xf32>
    %16 = arith.addf %13, %15 : vector<8x128xf32>
    %c0_14 = arith.constant 0 : index
    %c0_15 = arith.constant 0 : index
    %17 = vector.load %arg7[%c0_14, %c0_15] : memref<8x128xf32, #tpu.memory_space<vmem>>, vector<8x128xf32>
    tpu.vector_store %arg7[%c0_14, %c0_15], %16 {strides = array<i32>} : memref<8x128xf32, #tpu.memory_space<vmem>>, vector<8x128xf32>,
    return
  }
  func.func @transform_0(%arg0: i32) -> (i32, i32) {
    %c0_i32 = arith.constant 0 : i32
    %c0_i32_0 = arith.constant 0 : i32
    return %arg0, %c0_i32 : i32, i32
  }
  func.func @transform_1(%arg0: i32) -> (i32, i32) {
    %c0_i32 = arith.constant 0 : i32
    %c0_i32_0 = arith.constant 0 : i32
    %c0_i32_1 = arith.constant 0 : i32
    return %c0_i32, %c0_i32_0 : i32, i32
  }
  func.func @transform_2(%arg0: i32) -> (i32, i32) {
    %c0_i32 = arith.constant 0 : i32
    %c0_i32_0 = arith.constant 0 : i32
    %c0_i32_1 = arith.constant 0 : i32
    return %c0_i32, %c0_i32_0 : i32, i32
  }
  func.func @transform_3(%arg0: i32) -> (i32, i32) {
    %c0_i32 = arith.constant 0 : i32
    %c0_i32_0 = arith.constant 0 : i32
    %c0_i32_1 = arith.constant 0 : i32
    return %c0_i32, %c0_i32_0 : i32, i32
  }
  func.func @transform_4(%arg0: i32) -> (i32, i32) {
    %c0_i32 = arith.constant 0 : i32
    %c0_i32_0 = arith.constant 0 : i32
    %c0_i32_1 = arith.constant 0 : i32
    return %c0_i32, %c0_i32_0 : i32, i32
  }
  func.func @transform_5(%arg0: i32) -> (i32, i32) {
    %c0_i32 = arith.constant 0 : i32
    %c0_i32_0 = arith.constant 0 : i32
    %c0_i32_1 = arith.constant 0 : i32
    return %c0_i32, %c0_i32_0 : i32, i32
  }
  func.func @transform_6(%arg0: i32) -> (i32, i32) {
    %c0_i32 = arith.constant 0 : i32
    %c0_i32_0 = arith.constant 0 : i32
    return %arg0, %c0_i32 : i32, i32
  }
}

</mosaic_0001>

<bundles_post_ra>
// kernel: tpu_custom_call.1
= control target key start
LH: loop header
LB: loop body
LE: loop exit
PB: predicated region body
PF: predicated region fallthrough
CT: control target
= control target key end

     0   :  { %11 = vsyncpa [#allocation3], 0  ;;  %s2058_s0 = inlined_call_operand.hbm [shape: bf16[144,256], index: 0, kind: input, shape index: {}]   ;;  %s2059_s1 = inlined_call_operand.hbm [shape: bf16[256,512], index: 1, kind: input, shape index: {}]   ;;  %s2060_s2 = inlined_call_operand.hbm [shape: f32[1,512], index: 2, kind: input, shape index: {}]   ;;  %s2061_s3 = inlined_call_operand.vmem [shape: bf16[8,144], index: 3, kind: input, shape index: {}]   ;;  %s2062_s4 = inlined_call_operand.hbm [shape: bf16[512,128], index: 4, kind: input, shape index: {}]   ;;  %s2063_s5 = inlined_call_operand.vmem [shape: f32[1,128], index: 5, kind: input, shape index: {}]   ;;  %s2064_s6 = inlined_call_operand.hbm [shape: f32[8,128], index: 6, kind: output, shape index: {}]  }
   0x1   :  { %12 = vsyncpa [#allocation6], 0 }
   0x2   :  { %13 = vsyncpa [#allocation9], 0 }
   0x3   :  { %14 = vsyncpa [#allocation4], 0  ;;  %s1853_s21 = smov [#allocation5]   ;;  %s1735_s25 = scalar_lea.hbm %s2059_s1, 8192 }
   0x4   :  { %s32_s22 = sshll.u32 %s1853_s21, 4  ;;  %p1736_p0 = scmp.ne.s32.totalorder %s2059_s1, %s1735_s25  ;;  %s33_s22 = int_to_ptr.vmem [resolvable:$true] %s32_s22 }
   0x5   :  { %p1739_p1 = scmp.lt.u32.totalorder %s1735_s25, %s2059_s1 }
   0x7   :  { %p1741_p2 = pnand %p1739_p1, %p1736_p0 }
   0x9   :  { %1744 = shalt.err (!%p1741_p2)
}
   0xa   :  { %s1745_s30 = scalar_lea.vmem %s33_s22, 8192  ;;  %p1750_p4 = scmp.lt.s32.totalorder %s33_s22, %s33_s22 }
   0xb   :  { %p1746_p3 = scmp.ne.s32.totalorder %s33_s22, %s1745_s30  ;;  %p1751_p5 = scmp.lt.s32.totalorder %s1745_s30, %s1745_s30 }
   0xd   :  { %p1752_p6 = por %p1751_p5, %p1750_p4 }
   0xf   :  { %p1753_p7 = pnand %p1752_p6, %p1746_p3 }
  0x11   :  { %1756 = shalt.err (!%p1753_p7)
}
  0x12   :  { %s1854_s7 = smov 256   ;;  %s1855_s8 = smov 16  }
  0x13   :  { %38 = dma.hbm_to_vmem [thread:$0]  %s2059_s1, 8192, %s33_s22, [#allocation6], %s1854_s7, %s1854_s7, %s1855_s8  }
  0x14   :  { %s1856_s11 = smov [#allocation2]   ;;  %s1757_s15 = scalar_lea.hbm %s2058_s0, 2304 }
  0x15   :  { %s20_s12 = sshll.u32 %s1856_s11, 4  ;;  %p1758_p8 = scmp.ne.s32.totalorder %s2058_s0, %s1757_s15  ;;  %s21_s12 = int_to_ptr.vmem [resolvable:$true] %s20_s12 }
  0x16   :  { %p1761_p9 = scmp.lt.u32.totalorder %s1757_s15, %s2058_s0 }
  0x18   :  { %p1763_p10 = pnand %p1761_p9, %p1758_p8 }
  0x1a   :  { %1766 = shalt.err (!%p1763_p10)
}
  0x1b   :  { %s1767_s20 = scalar_lea.vmem %s21_s12, 2304  ;;  %p1772_p12 = scmp.lt.s32.totalorder %s21_s12, %s21_s12 }
  0x1c   :  { %p1768_p11 = scmp.ne.s32.totalorder %s21_s12, %s1767_s20  ;;  %p1773_p13 = scmp.lt.s32.totalorder %s1767_s20, %s1767_s20 }
  0x1e   :  { %p1774_p0 = por %p1773_p13, %p1772_p12 }
  0x20   :  { %p1775_p1 = pnand %p1774_p0, %p1768_p11 }
  0x22   :  { %1778 = shalt.err (!%p1775_p1)
}
  0x23   :  { %s1857_s1 = smov 128   ;;  %s1858_s21 = smov 8  }
  0x24   :  { %26 = dma.hbm_to_vmem [thread:$0]  %s2058_s0, 2304, %s21_s12, [#allocation3], %s1857_s1, %s1857_s1, %s1858_s21  }
  0x25   :  { %s1859_s24 = smov [#allocation7]   ;;  %s1860_s26 = smov [#allocation8]  }
  0x26   :  { %s45_s25 = sshll.u32 %s1859_s24, 4  ;;  %s56_s27 = sshll.u32 %s1860_s26, 4  ;;  %s46_s25 = int_to_ptr.vmem [resolvable:$true] %s45_s25  ;;  %s1923_s27 = int_to_ptr.vmem [resolvable:$true] %s56_s27 }
  0x27   :  { %s1779_s30 = scalar_lea.hbm %s2060_s2, 64 }
  0x28   :  { %p1780_p2 = scmp.ne.s32.totalorder %s2060_s2, %s1779_s30  ;;  %p1783_p3 = scmp.lt.u32.totalorder %s1779_s30, %s2060_s2 }
  0x2a   :  { %p1785_p4 = pnand %p1783_p3, %p1780_p2 }
  0x2c   :  { %1788 = shalt.err (!%p1785_p4)
}
  0x2d   :  { %s1789_s0 = scalar_lea.vmem %s46_s25, 64  ;;  %p1794_p6 = scmp.lt.s32.totalorder %s46_s25, %s46_s25 }
  0x2e   :  { %p1790_p5 = scmp.ne.s32.totalorder %s46_s25, %s1789_s0  ;;  %p1795_p7 = scmp.lt.s32.totalorder %s1789_s0, %s1789_s0 }
  0x30   :  { %p1796_p8 = por %p1795_p7, %p1794_p6 }
  0x32   :  { %p1797_p9 = pnand %p1796_p8, %p1790_p5 }
  0x34   :  { %1800 = shalt.err (!%p1797_p9)
}
  0x35   :  { %48 = dma.hbm_to_vmem [thread:$0]  %s2060_s2, 64, %s46_s25, [#allocation6]  }
  0x36   :  { %s1801_s15 = scalar_lea.hbm %s2062_s4, 4096 }
  0x37   :  { %p1802_p10 = scmp.ne.s32.totalorder %s2062_s4, %s1801_s15  ;;  %p1805_p11 = scmp.lt.u32.totalorder %s1801_s15, %s2062_s4 }
  0x39   :  { %p1807_p12 = pnand %p1805_p11, %p1802_p10 }
  0x3b   :  { %1810 = shalt.err (!%p1807_p12)
}
  0x3c   :  { %s1811_s20 = scalar_lea.vmem %s1923_s27, 4096  ;;  %p1816_p0 = scmp.lt.s32.totalorder %s1923_s27, %s1923_s27 }
  0x3d   :  { %p1812_p13 = scmp.ne.s32.totalorder %s1923_s27, %s1811_s20  ;;  %p1817_p1 = scmp.lt.s32.totalorder %s1811_s20, %s1811_s20 }
  0x3f   :  { %p1818_p2 = por %p1817_p1, %p1816_p0 }
  0x41   :  { %p1819_p3 = pnand %p1818_p2, %p1812_p13 }
  0x43   :  { %1822 = shalt.err (!%p1819_p3)
}
  0x44   :  { %s1861_s2 = smov 64   ;;  %s1862_s1 = smov 4  }
  0x45   :  { %62 = dma.hbm_to_vmem [thread:$0]  %s2062_s4, 4096, %s1923_s27, [#allocation9], %s1861_s2, %s1861_s2, %s1862_s1  }
  0x46   :  { %1845 = dma.done.wait [#allocation3], 2304  }
  0x47   :  { %1846 = vsyncadd [#allocation3], 4294964992 }
  0x48   :  { %1847 = dma.done.wait [#allocation6], 8256  }
  0x49   :  { %1848 = vsyncadd [#allocation6], 4294959040 }
  0x4a   :  { %1849 = dma.done.wait [#allocation9], 4096  }
  0x4b   :  { %1850 = vsyncadd [#allocation9], 4294963200  ;;  %v1578_v0 = vld [vmem:[#allocation5 + $0x4] ss:$16 sps:$4 sm:$0xff]   ;;  %v1580_v1 = vld [vmem:[#allocation5 + $0xc] ss:$16 sps:$4 sm:$0xff]  }
  0x4c   :  { %592 = vmatprep.subr.bf16.mxu0 %v1578_v0  ;;  %v1582_v2 = vld [vmem:[#allocation5] ss:$16 sps:$4 sm:$0xff]   ;;  %v1583_v3 = vld [vmem:[#allocation5 + $0x8] ss:$16 sps:$4 sm:$0xff]   ;;  %715 = vmatprep.subr.bf16.mxu1 %v1580_v1  ;;  %v1584_v4 = vld [vmem:[#allocation5 + $0x24] ss:$16 sps:$4 sm:$0xff]  }
  0x4d   :  { %593 = vmatpush1.bf16.msra.mxu0 %v1582_v2  ;;  %716 = vmatpush1.bf16.msra.mxu1 %v1583_v3  ;;  %v1586_v5 = vld [vmem:[#allocation5 + $0x2c] ss:$16 sps:$4 sm:$0xff]   ;;  %v1588_v6 = vld [vmem:[#allocation5 + $0x20] ss:$16 sps:$4 sm:$0xff]   ;;  %v1589_v7 = vld [vmem:[#allocation5 + $0x28] ss:$16 sps:$4 sm:$0xff]  }
  0x4e   :  { %594 = vmatprep.subr.bf16.mxu0 %v1584_v4  ;;  %717 = vmatprep.subr.bf16.mxu1 %v1586_v5  ;;  %v1590_v8 = vld [vmem:[#allocation5 + $0x44] ss:$16 sps:$4 sm:$0xff]   ;;  %v1592_v9 = vld [vmem:[#allocation5 + $0x4c] ss:$16 sps:$4 sm:$0xff]   ;;  %v1594_v10 = vld [vmem:[#allocation5 + $0x40] ss:$16 sps:$4 sm:$0xff]  }
  0x4f   :  { %v1595_v11 = vld [vmem:[#allocation5 + $0x48] ss:$16 sps:$4 sm:$0xff]   ;;  %v1596_v12 = vld [vmem:[#allocation5 + $0x64] ss:$16 sps:$4 sm:$0xff]   ;;  %v1598_v13 = vld [vmem:[#allocation5 + $0x6c] ss:$16 sps:$4 sm:$0xff]  }
  0x50   :  { %v1600_v14 = vld [vmem:[#allocation5 + $0x60] ss:$16 sps:$4 sm:$0xff]   ;;  %v1601_v15 = vld [vmem:[#allocation5 + $0x68] ss:$16 sps:$4 sm:$0xff]   ;;  %v1602_v16 = vld [vmem:[#allocation5 + $0x84] ss:$16 sps:$4 sm:$0xff]  }
  0x51   :  { %595 = vmatpush1.bf16.msra.mxu0 %v1588_v6  ;;  %718 = vmatpush1.bf16.msra.mxu1 %v1589_v7  ;;  %v1604_v17 = vld [vmem:[#allocation5 + $0x8c] ss:$16 sps:$4 sm:$0xff]   ;;  %v1606_v18 = vld [vmem:[#allocation5 + $0x80] ss:$16 sps:$4 sm:$0xff]   ;;  %v1607_v19 = vld [vmem:[#allocation5 + $0x88] ss:$16 sps:$4 sm:$0xff]  }
  0x52   :  { %596 = vmatprep.subr.bf16.mxu0 %v1590_v8  ;;  %719 = vmatprep.subr.bf16.mxu1 %v1592_v9  ;;  %v1608_v20 = vld [vmem:[#allocation5 + $0xa4] ss:$16 sps:$4 sm:$0xff]   ;;  %v1610_v21 = vld [vmem:[#allocation5 + $0xac] ss:$16 sps:$4 sm:$0xff]   ;;  %v1612_v22 = vld [vmem:[#allocation5 + $0xa0] ss:$16 sps:$4 sm:$0xff]  }
  0x53   :  { %v1613_v23 = vld [vmem:[#allocation5 + $0xa8] ss:$16 sps:$4 sm:$0xff]   ;;  %v1614_v24 = vld [vmem:[#allocation5 + $0xc4] ss:$16 sps:$4 sm:$0xff]   ;;  %v1616_v25 = vld [vmem:[#allocation5 + $0xcc] ss:$16 sps:$4 sm:$0xff]  }
  0x54   :  { %v1618_v26 = vld [vmem:[#allocation5 + $0xc0] ss:$16 sps:$4 sm:$0xff]   ;;  %v1619_v27 = vld [vmem:[#allocation5 + $0xc8] ss:$16 sps:$4 sm:$0xff]   ;;  %v1620_v28 = vld [vmem:[#allocation5 + $0xe4] ss:$16 sps:$4 sm:$0xff]  }
  0x55   :  { %597 = vmatpush1.bf16.msra.mxu0 %v1594_v10  ;;  %720 = vmatpush1.bf16.msra.mxu1 %v1595_v11  ;;  %v1622_v29 = vld [vmem:[#allocation5 + $0xec] ss:$16 sps:$4 sm:$0xff]   ;;  %v1624_v30 = vld [vmem:[#allocation5 + $0xe0] ss:$16 sps:$4 sm:$0xff]   ;;  %v1625_v31 = vld [vmem:[#allocation5 + $0xe8] ss:$16 sps:$4 sm:$0xff]  }
  0x56   :  { %598 = vmatprep.subr.bf16.mxu0 %v1596_v12  ;;  %721 = vmatprep.subr.bf16.mxu1 %v1598_v13  ;;  %v1626_v32 = vld [vmem:[#allocation5 + $0x104] ss:$16 sps:$4 sm:$0xff]   ;;  %v1628_v33 = vld [vmem:[#allocation5 + $0x10c] ss:$16 sps:$4 sm:$0xff]   ;;  %v1630_v34 = vld [vmem:[#allocation5 + $0x100] ss:$16 sps:$4 sm:$0xff]  }
  0x57   :  { %v1631_v35 = vld [vmem:[#allocation5 + $0x108] ss:$16 sps:$4 sm:$0xff]   ;;  %v1632_v36 = vld [vmem:[#allocation5 + $0x124] ss:$16 sps:$4 sm:$0xff]   ;;  %v1634_v37 = vld [vmem:[#allocation5 + $0x12c] ss:$16 sps:$4 sm:$0xff]  }
  0x58   :  { %v1636_v38 = vld [vmem:[#allocation5 + $0x120] ss:$16 sps:$4 sm:$0xff]   ;;  %v1637_v39 = vld [vmem:[#allocation5 + $0x128] ss:$16 sps:$4 sm:$0xff]   ;;  %v1638_v40 = vld [vmem:[#allocation5 + $0x144] ss:$16 sps:$4 sm:$0xff]  }
  0x59   :  { %599 = vmatpush1.bf16.msra.mxu0 %v1600_v14  ;;  %722 = vmatpush1.bf16.msra.mxu1 %v1601_v15  ;;  %v1640_v41 = vld [vmem:[#allocation5 + $0x14c] ss:$16 sps:$4 sm:$0xff]   ;;  %v1642_v42 = vld [vmem:[#allocation5 + $0x140] ss:$16 sps:$4 sm:$0xff]   ;;  %v1643_v43 = vld [vmem:[#allocation5 + $0x148] ss:$16 sps:$4 sm:$0xff]  }
  0x5a   :  { %600 = vmatprep.subr.bf16.mxu0 %v1602_v16  ;;  %723 = vmatprep.subr.bf16.mxu1 %v1604_v17  ;;  %v1644_v44 = vld [vmem:[#allocation5 + $0x164] ss:$16 sps:$4 sm:$0xff]   ;;  %v1646_v45 = vld [vmem:[#allocation5 + $0x16c] ss:$16 sps:$4 sm:$0xff]   ;;  %v1648_v46 = vld [vmem:[#allocation5 + $0x160] ss:$16 sps:$4 sm:$0xff]  }
  0x5b   :  { %v1649_v47 = vld [vmem:[#allocation5 + $0x168] ss:$16 sps:$4 sm:$0xff]   ;;  %v1676_v48 = vld [vmem:[#allocation2 + $0x4] ss:$8 sps:$4 sm:$0xff]   ;;  %v1654_v51 = vld [vmem:[#allocation5 + $0x180] ss:$16 sps:$4 sm:$0xff]  }
  0x5c   :  { %v1650_v49 = vld [vmem:[#allocation5 + $0x184] ss:$16 sps:$4 sm:$0xff]   ;;  %v1652_v50 = vld [vmem:[#allocation5 + $0x18c] ss:$16 sps:$4 sm:$0xff]   ;;  %624 = vmatprep.mubr.bf16.mxu0 %v1676_v48  ;;  %747 = vmatprep.mubr.bf16.mxu1 %v1676_v48  ;;  %v1655_v52 = vld [vmem:[#allocation5 + $0x188] ss:$16 sps:$4 sm:$0xff]  }
  0x5d   :  { %601 = vmatpush1.bf16.msra.mxu0 %v1606_v18  ;;  %724 = vmatpush1.bf16.msra.mxu1 %v1607_v19  ;;  %v1656_v53 = vld [vmem:[#allocation5 + $0x1a4] ss:$16 sps:$4 sm:$0xff]   ;;  %v1658_v54 = vld [vmem:[#allocation5 + $0x1ac] ss:$16 sps:$4 sm:$0xff]   ;;  %v1660_v55 = vld [vmem:[#allocation5 + $0x1a0] ss:$16 sps:$4 sm:$0xff]  }
  0x5e   :  { %602 = vmatprep.subr.bf16.mxu0 %v1608_v20  ;;  %725 = vmatprep.subr.bf16.mxu1 %v1610_v21  ;;  %v1661_v56 = vld [vmem:[#allocation5 + $0x1a8] ss:$16 sps:$4 sm:$0xff]   ;;  %v1662_v57 = vld [vmem:[#allocation5 + $0x1c4] ss:$16 sps:$4 sm:$0xff]   ;;  %v1664_v58 = vld [vmem:[#allocation5 + $0x1cc] ss:$16 sps:$4 sm:$0xff]   ;;  %v162_v20 = vlaneseq }
  0x5f   :  { %v1666_v59 = vld [vmem:[#allocation5 + $0x1c0] ss:$16 sps:$4 sm:$0xff]   ;;  %v1667_v60 = vld [vmem:[#allocation5 + $0x1c8] ss:$16 sps:$4 sm:$0xff]   ;;  %v1668_v61 = vld [vmem:[#allocation5 + $0x1e4] ss:$16 sps:$4 sm:$0xff]  }
  0x60   :  { %v1670_v62 = vld [vmem:[#allocation5 + $0x1ec] ss:$16 sps:$4 sm:$0xff]   ;;  %v1672_v63 = vld [vmem:[#allocation5 + $0x1e0] ss:$16 sps:$4 sm:$0xff]   ;;  %v1673_v0 = vld [vmem:[#allocation5 + $0x1e8] ss:$16 sps:$4 sm:$0xff]  }
  0x61   :  { %603 = vmatpush1.bf16.msra.mxu0 %v1612_v22  ;;  %726 = vmatpush1.bf16.msra.mxu1 %v1613_v23  ;;  %v1674_v1 = vld [vmem:[#allocation2] ss:$8 sps:$4 sm:$0xff]   ;;  %v1677_v2 = vld [vmem:[#allocation2 + $0x14] ss:$8 sps:$4 sm:$0xff]   ;;  %v1679_v3 = vld [vmem:[#allocation2 + $0x10] ss:$8 sps:$4 sm:$0xff]  }
  0x62   :  { %604 = vmatprep.subr.bf16.mxu0 %v1614_v24  ;;  %727 = vmatprep.subr.bf16.mxu1 %v1616_v25  ;;  %v1680_v4 = vld [vmem:[#allocation2 + $0x24] ss:$8 sps:$4 sm:$0xff]   ;;  %v1682_v5 = vld [vmem:[#allocation2 + $0x20] ss:$8 sps:$4 sm:$0xff]   ;;  %v1683_v6 = vld [vmem:[#allocation2 + $0x34] ss:$8 sps:$4 sm:$0xff]  }
  0x63   :  { %v1685_v7 = vld [vmem:[#allocation2 + $0x30] ss:$8 sps:$4 sm:$0xff]   ;;  %v1686_v8 = vld [vmem:[#allocation2 + $0x44] ss:$8 sps:$4 sm:$0xff]   ;;  %v1688_v9 = vld [vmem:[#allocation2 + $0x40] ss:$8 sps:$4 sm:$0xff]  }
  0x64   :  { %v1689_v10 = vld [vmem:[#allocation2 + $0x54] ss:$8 sps:$4 sm:$0xff]   ;;  %v1691_v11 = vld [vmem:[#allocation2 + $0x50] ss:$8 sps:$4 sm:$0xff]   ;;  %v1692_v12 = vld [vmem:[#allocation2 + $0x64] ss:$8 sps:$4 sm:$0xff]  }
  0x65   :  { %605 = vmatpush1.bf16.msra.mxu0 %v1618_v26  ;;  %728 = vmatpush1.bf16.msra.mxu1 %v1619_v27  ;;  %v1694_v13 = vld [vmem:[#allocation2 + $0x60] ss:$8 sps:$4 sm:$0xff]   ;;  %v1695_v14 = vld [vmem:[#allocation2 + $0x74] ss:$8 sps:$4 sm:$0xff]   ;;  %v1697_v15 = vld [vmem:[#allocation2 + $0x70] ss:$8 sps:$4 sm:$0xff]  }
  0x66   :  { %606 = vmatprep.subr.bf16.mxu0 %v1620_v28  ;;  %729 = vmatprep.subr.bf16.mxu1 %v1622_v29  ;;  %v1698_v16 = vld [vmem:[#allocation2 + $0x84] ss:$8 sps:$4 sm:$0xff]   ;;  %v1700_v17 = vld [vmem:[#allocation2 + $0x80] ss:$8 sps:$4 sm:$0xff]   ;;  %vm953_vm0 = vcmask 130048   ;;  %v163_v21 = vshrl.u32 %v162_v20, 7 }
  0x67   :  { %v1957_v18 = vld [vmem:[%s2061_s3] sm:$0xff]  ;;  %v160_v24 = vld [vmem:[#allocation7] sm:$0xf]  ;;  %s1863_s25 = smov [#allocation10]  }
  0x68   :  { %v1487_v19 = vcombine.high %v1957_v18, %v1957_v18  ;;  %v164_v22 = vsub.s32 0, %v163_v21  ;;  %v172_v23 = vsub.s32 2, %v163_v21  ;;  %v168_v25 = vsub.s32 1, %v163_v21  ;;  %s1393_s26 = sshll.u32 %s1863_s25, 4  ;;  %s1394_s26 = int_to_ptr.vmem [resolvable:$true] %s1393_s26 }
  0x69   :  { %607 = vmatpush1.bf16.msra.mxu0 %v1624_v30  ;;  %730 = vmatpush1.bf16.msra.mxu1 %v1625_v31  ;;  %v176_v26 = vsub.s32 3, %v163_v21  ;;  %s1823_s27 = scalar_lea.vmem %s1394_s26, 128  ;;  %p1828_p5 = scmp.lt.s32.totalorder %s1394_s26, %s1394_s26 }
  0x6a   :  { %608 = vmatprep.subr.bf16.mxu0 %v1626_v32  ;;  %731 = vmatprep.subr.bf16.mxu1 %v1628_v33  ;;  %v1961_v27 = vrot.slane %v160_v24, %v164_v22  ;;  %v1963_v28 = vrot.slane %v160_v24, %v172_v23  ;;  %v1965_v29 = vrot.slane %v160_v24, %v168_v25  ;;  %p1824_p4 = scmp.ne.s32.totalorder %s1394_s26, %s1823_s27  ;;  %p1829_p6 = scmp.lt.s32.totalorder %s1823_s27, %s1823_s27 }
  0x6b   :  { %v1967_v30 = vrot.slane %v160_v24, %v176_v26 }
  0x6c   :  { %p1830_p7 = por %p1829_p6, %p1828_p5 }
  0x6d   :  { %609 = vmatpush1.bf16.msra.mxu0 %v1630_v34  ;;  %732 = vmatpush1.bf16.msra.mxu1 %v1631_v35 }
  0x6e   :  { %610 = vmatprep.subr.bf16.mxu0 %v1632_v36  ;;  %733 = vmatprep.subr.bf16.mxu1 %v1634_v37  ;;  %p1831_p8 = pnand %p1830_p7, %p1824_p4 }
  0x71   :  { %611 = vmatpush1.bf16.msra.mxu0 %v1636_v38  ;;  %734 = vmatpush1.bf16.msra.mxu1 %v1637_v39 }
  0x72   :  { %612 = vmatprep.subr.bf16.mxu0 %v1638_v40  ;;  %735 = vmatprep.subr.bf16.mxu1 %v1640_v41 }
  0x75   :  { %613 = vmatpush1.bf16.msra.mxu0 %v1642_v42  ;;  %736 = vmatpush1.bf16.msra.mxu1 %v1643_v43 }
  0x76   :  { %614 = vmatprep.subr.bf16.mxu0 %v1644_v44  ;;  %737 = vmatprep.subr.bf16.mxu1 %v1646_v45 }
  0x79   :  { %615 = vmatpush1.bf16.msra.mxu0 %v1648_v46  ;;  %738 = vmatpush1.bf16.msra.mxu1 %v1649_v47 }
  0x7a   :  { %616 = vmatprep.subr.bf16.mxu0 %v1650_v49  ;;  %739 = vmatprep.subr.bf16.mxu1 %v1652_v50 }
  0x7d   :  { %617 = vmatpush1.bf16.msra.mxu0 %v1654_v51  ;;  %740 = vmatpush1.bf16.msra.mxu1 %v1655_v52 }
  0x7e   :  { %618 = vmatprep.subr.bf16.mxu0 %v1656_v53  ;;  %741 = vmatprep.subr.bf16.mxu1 %v1658_v54 }
  0x81   :  { %619 = vmatpush1.bf16.msra.mxu0 %v1660_v55  ;;  %742 = vmatpush1.bf16.msra.mxu1 %v1661_v56 }
  0x82   :  { %620 = vmatprep.subr.bf16.mxu0 %v1662_v57  ;;  %743 = vmatprep.subr.bf16.mxu1 %v1664_v58 }
  0x85   :  { %621 = vmatpush1.bf16.msra.mxu0 %v1666_v59  ;;  %744 = vmatpush1.bf16.msra.mxu1 %v1667_v60 }
  0x86   :  { %622 = vmatprep.subr.bf16.mxu0 %v1668_v61  ;;  %745 = vmatprep.subr.bf16.mxu1 %v1670_v62 }
  0x89   :  { %623 = vmatpush1.bf16.msra.mxu0 %v1672_v63  ;;  %746 = vmatpush1.bf16.msra.mxu1 %v1673_v0 }
  0x8c   :  { %625 = vmatmul.mubr.bf16.vlgmr.msra.gmra.mrb[0].mxu0 %v1674_v1  ;;  %748 = vmatmul.mubr.bf16.vlgmr.msra.gmra.mrb[0].mxu1 %v1674_v1 }
  0x8d   :  { %634 = vmatprep.mubr.bf16.mxu0 %v1677_v2  ;;  %757 = vmatprep.mubr.bf16.mxu1 %v1677_v2 }
  0x94   :  { %635 = vmatmul.mubr.bf16.gmra.mrb[4].mxu0 %v1679_v3  ;;  %758 = vmatmul.mubr.bf16.gmra.mrb[4].mxu1 %v1679_v3 }
  0x95   :  { %644 = vmatprep.mubr.bf16.mxu0 %v1680_v4  ;;  %767 = vmatprep.mubr.bf16.mxu1 %v1680_v4 }
  0x9c   :  { %645 = vmatmul.mubr.bf16.gmra.mrb[8].mxu0 %v1682_v5  ;;  %768 = vmatmul.mubr.bf16.gmra.mrb[8].mxu1 %v1682_v5 }
  0x9d   :  { %654 = vmatprep.mubr.bf16.mxu0 %v1683_v6  ;;  %777 = vmatprep.mubr.bf16.mxu1 %v1683_v6 }
  0xa4   :  { %655 = vmatmul.mubr.bf16.gmra.mrb[12].mxu0 %v1685_v7  ;;  %778 = vmatmul.mubr.bf16.gmra.mrb[12].mxu1 %v1685_v7 }
  0xa5   :  { %664 = vmatprep.mubr.bf16.mxu0 %v1686_v8  ;;  %787 = vmatprep.mubr.bf16.mxu1 %v1686_v8 }
  0xac   :  { %665 = vmatmul.mubr.bf16.gmra.mrb[16].mxu0 %v1688_v9  ;;  %788 = vmatmul.mubr.bf16.gmra.mrb[16].mxu1 %v1688_v9 }
  0xad   :  { %674 = vmatprep.mubr.bf16.mxu0 %v1689_v10  ;;  %797 = vmatprep.mubr.bf16.mxu1 %v1689_v10 }
  0xb4   :  { %675 = vmatmul.mubr.bf16.gmra.mrb[20].mxu0 %v1691_v11  ;;  %798 = vmatmul.mubr.bf16.gmra.mrb[20].mxu1 %v1691_v11 }
  0xb5   :  { %684 = vmatprep.mubr.bf16.mxu0 %v1692_v12  ;;  %807 = vmatprep.mubr.bf16.mxu1 %v1692_v12 }
  0xbc   :  { %685 = vmatmul.mubr.bf16.gmra.mrb[24].mxu0 %v1694_v13  ;;  %808 = vmatmul.mubr.bf16.gmra.mrb[24].mxu1 %v1694_v13 }
  0xbd   :  { %694 = vmatprep.mubr.bf16.mxu0 %v1695_v14  ;;  %817 = vmatprep.mubr.bf16.mxu1 %v1695_v14 }
  0xc4   :  { %695 = vmatmul.mubr.bf16.gmra.mrb[28].mxu0 %v1697_v15  ;;  %818 = vmatmul.mubr.bf16.gmra.mrb[28].mxu1 %v1697_v15 }
  0xc5   :  { %704 = vmatprep.mubr.bf16.mxu0 %v1698_v16  ;;  %827 = vmatprep.mubr.bf16.mxu1 %v1698_v16 }
  0xcc   :  { %705 = vmatmul.mubr.bf16.gmra.mrb[32].mxu0 %v1700_v17  ;;  %828 = vmatmul.mubr.bf16.gmra.mrb[32].mxu1 %v1700_v17 }
  0xcd   :  { %1488 = vmatprep.mubr.msk.bf16.mxu0 %vm953_vm0, %v1487_v19  ;;  %1489 = vmatprep.mubr.msk.bf16.mxu1 %vm953_vm0, %v1487_v19 }
 0x15f   :  { %v626_v31 = vpop.f32.mrb[0].mxu0  ;;  %v749_v32 = vpop.f32.mrb[0].mxu1 }
 0x160   :  { %v627_v33 = vadd.f32 %v626_v31, %v1961_v27  ;;  %v750_v34 = vadd.f32 %v749_v32, %v1963_v28  ;;  %v628_v35 = vpop.f32.mrb[1].mxu0  ;;  %v751_v36 = vpop.f32.mrb[1].mxu1 }
 0x161   :  { %v629_v37 = vadd.f32 %v628_v35, %v1965_v29  ;;  %v752_v38 = vadd.f32 %v751_v36, %v1967_v30  ;;  %v630_v39 = vpop.f32.mrb[2].mxu0  ;;  %v753_v40 = vpop.f32.mrb[2].mxu1 }
 0x162   :  { %v840_v41 = vmax.f32 %v750_v34, 0.0  ;;  %v631_v42 = vadd.f32 %v630_v39, %v1961_v27  ;;  %v754_v43 = vadd.f32 %v753_v40, %v1963_v28  ;;  %v632_v44 = vpop.f32.mrb[3].mxu0  ;;  %v755_v45 = vpop.f32.mrb[3].mxu1  ;;  %v838_v49 = vmax.f32 %v627_v33, 0.0 }
 0x163   :  { %v841_v46 = vmax.f32 %v752_v38, 0.0  ;;  %v633_v47 = vadd.f32 %v632_v44, %v1965_v29  ;;  %v756_v48 = vadd.f32 %v755_v45, %v1967_v30  ;;  %v839_v52 = vmax.f32 %v629_v37, 0.0 }
 0x164   :  { %v842_v50 = vmax.f32 %v631_v42, 0.0  ;;  %v844_v51 = vmax.f32 %v754_v43, 0.0 }
 0x165   :  { %v843_v53 = vmax.f32 %v633_v47, 0.0  ;;  %v845_v54 = vmax.f32 %v756_v48, 0.0 }
 0x166   :  { %v910_v55 = vpack.c.bf16 %v842_v50, %v838_v49  ;;  %v912_v56 = vpack.c.bf16 %v844_v51, %v840_v41 }
 0x167   :  { %v911_v57 = vpack.c.bf16 %v843_v53, %v839_v52  ;;  %v913_v58 = vpack.c.bf16 %v845_v54, %v841_v46  ;;  %v636_v59 = vpop.f32.mrb[4].mxu0  ;;  %v759_v60 = vpop.f32.mrb[4].mxu1 }
 0x168   :  { %v637_v61 = vadd.f32 %v636_v59, %v1961_v27  ;;  %v760_v62 = vadd.f32 %v759_v60, %v1963_v28  ;;  %v638_v63 = vpop.f32.mrb[5].mxu0  ;;  %v761_v0 = vpop.f32.mrb[5].mxu1 }
 0x169   :  { %v639_v1 = vadd.f32 %v638_v63, %v1965_v29  ;;  %v762_v2 = vadd.f32 %v761_v0, %v1967_v30  ;;  %v640_v3 = vpop.f32.mrb[6].mxu0  ;;  %v763_v4 = vpop.f32.mrb[6].mxu1  ;;  %957 = vmatprep.subr.bf16.mxu0 %v911_v57  ;;  %998 = vmatprep.subr.bf16.mxu1 %v913_v58 }
 0x16a   :  { %v848_v5 = vmax.f32 %v760_v62, 0.0  ;;  %v641_v6 = vadd.f32 %v640_v3, %v1961_v27  ;;  %v764_v7 = vadd.f32 %v763_v4, %v1963_v28  ;;  %v642_v8 = vpop.f32.mrb[7].mxu0  ;;  %v765_v9 = vpop.f32.mrb[7].mxu1  ;;  %958 = vmatpush1.bf16.msra.mxu0 %v910_v55  ;;  %999 = vmatpush1.bf16.msra.mxu1 %v912_v56  ;;  %v846_v13 = vmax.f32 %v637_v61, 0.0 }
 0x16b   :  { %v849_v10 = vmax.f32 %v762_v2, 0.0  ;;  %v643_v11 = vadd.f32 %v642_v8, %v1965_v29  ;;  %v766_v12 = vadd.f32 %v765_v9, %v1967_v30  ;;  %v847_v16 = vmax.f32 %v639_v1, 0.0 }
 0x16c   :  { %v850_v14 = vmax.f32 %v641_v6, 0.0  ;;  %v852_v15 = vmax.f32 %v764_v7, 0.0 }
 0x16d   :  { %v851_v17 = vmax.f32 %v643_v11, 0.0  ;;  %v853_v19 = vmax.f32 %v766_v12, 0.0 }
 0x16e   :  { %v914_v20 = vpack.c.bf16 %v850_v14, %v846_v13  ;;  %v916_v21 = vpack.c.bf16 %v852_v15, %v848_v5 }
 0x16f   :  { %v915_v22 = vpack.c.bf16 %v851_v17, %v847_v16  ;;  %v917_v23 = vpack.c.bf16 %v853_v19, %v849_v10  ;;  %v646_v24 = vpop.f32.mrb[8].mxu0  ;;  %v769_v25 = vpop.f32.mrb[8].mxu1 }
 0x170   :  { %v647_v26 = vadd.f32 %v646_v24, %v1961_v27  ;;  %v770_v31 = vadd.f32 %v769_v25, %v1963_v28  ;;  %v648_v32 = vpop.f32.mrb[9].mxu0  ;;  %v771_v33 = vpop.f32.mrb[9].mxu1 }
 0x171   :  { %v649_v34 = vadd.f32 %v648_v32, %v1965_v29  ;;  %v772_v35 = vadd.f32 %v771_v33, %v1967_v30  ;;  %v650_v36 = vpop.f32.mrb[10].mxu0  ;;  %v773_v37 = vpop.f32.mrb[10].mxu1  ;;  %959 = vmatprep.subr.bf16.mxu0 %v915_v22  ;;  %1000 = vmatprep.subr.bf16.mxu1 %v917_v23 }
 0x172   :  { %v856_v38 = vmax.f32 %v770_v31, 0.0  ;;  %v651_v39 = vadd.f32 %v650_v36, %v1961_v27  ;;  %v774_v40 = vadd.f32 %v773_v37, %v1963_v28  ;;  %v652_v41 = vpop.f32.mrb[11].mxu0  ;;  %v775_v42 = vpop.f32.mrb[11].mxu1  ;;  %960 = vmatpush1.bf16.msra.mxu0 %v914_v20  ;;  %1001 = vmatpush1.bf16.msra.mxu1 %v916_v21  ;;  %v854_v46 = vmax.f32 %v647_v26, 0.0 }
 0x173   :  { %v857_v43 = vmax.f32 %v772_v35, 0.0  ;;  %v653_v44 = vadd.f32 %v652_v41, %v1965_v29  ;;  %v776_v45 = vadd.f32 %v775_v42, %v1967_v30  ;;  %v855_v49 = vmax.f32 %v649_v34, 0.0 }
 0x174   :  { %v858_v47 = vmax.f32 %v651_v39, 0.0  ;;  %v860_v48 = vmax.f32 %v774_v40, 0.0 }
 0x175   :  { %v859_v50 = vmax.f32 %v653_v44, 0.0  ;;  %v861_v51 = vmax.f32 %v776_v45, 0.0 }
 0x176   :  { %v918_v52 = vpack.c.bf16 %v858_v47, %v854_v46  ;;  %v920_v53 = vpack.c.bf16 %v860_v48, %v856_v38 }
 0x177   :  { %v919_v54 = vpack.c.bf16 %v859_v50, %v855_v49  ;;  %v921_v55 = vpack.c.bf16 %v861_v51, %v857_v43  ;;  %v656_v56 = vpop.f32.mrb[12].mxu0  ;;  %v779_v57 = vpop.f32.mrb[12].mxu1 }
 0x178   :  { %v657_v58 = vadd.f32 %v656_v56, %v1961_v27  ;;  %v780_v59 = vadd.f32 %v779_v57, %v1963_v28  ;;  %v658_v60 = vpop.f32.mrb[13].mxu0  ;;  %v781_v61 = vpop.f32.mrb[13].mxu1 }
 0x179   :  { %v659_v62 = vadd.f32 %v658_v60, %v1965_v29  ;;  %v782_v63 = vadd.f32 %v781_v61, %v1967_v30  ;;  %v660_v0 = vpop.f32.mrb[14].mxu0  ;;  %v783_v1 = vpop.f32.mrb[14].mxu1  ;;  %961 = vmatprep.subr.bf16.mxu0 %v919_v54  ;;  %1002 = vmatprep.subr.bf16.mxu1 %v921_v55 }
 0x17a   :  { %v864_v2 = vmax.f32 %v780_v59, 0.0  ;;  %v661_v3 = vadd.f32 %v660_v0, %v1961_v27  ;;  %v784_v4 = vadd.f32 %v783_v1, %v1963_v28  ;;  %v662_v5 = vpop.f32.mrb[15].mxu0  ;;  %v785_v6 = vpop.f32.mrb[15].mxu1  ;;  %962 = vmatpush1.bf16.msra.mxu0 %v918_v52  ;;  %1003 = vmatpush1.bf16.msra.mxu1 %v920_v53  ;;  %v862_v10 = vmax.f32 %v657_v58, 0.0 }
 0x17b   :  { %v865_v7 = vmax.f32 %v782_v63, 0.0  ;;  %v663_v8 = vadd.f32 %v662_v5, %v1965_v29  ;;  %v786_v9 = vadd.f32 %v785_v6, %v1967_v30  ;;  %v863_v13 = vmax.f32 %v659_v62, 0.0 }
 0x17c   :  { %v866_v11 = vmax.f32 %v661_v3, 0.0  ;;  %v868_v12 = vmax.f32 %v784_v4, 0.0 }
 0x17d   :  { %v867_v14 = vmax.f32 %v663_v8, 0.0  ;;  %v869_v15 = vmax.f32 %v786_v9, 0.0 }
 0x17e   :  { %v922_v16 = vpack.c.bf16 %v866_v11, %v862_v10  ;;  %v924_v17 = vpack.c.bf16 %v868_v12, %v864_v2 }
 0x17f   :  { %v923_v19 = vpack.c.bf16 %v867_v14, %v863_v13  ;;  %v925_v20 = vpack.c.bf16 %v869_v15, %v865_v7  ;;  %v666_v21 = vpop.f32.mrb[16].mxu0  ;;  %v789_v22 = vpop.f32.mrb[16].mxu1 }
 0x180   :  { %v667_v23 = vadd.f32 %v666_v21, %v1961_v27  ;;  %v790_v24 = vadd.f32 %v789_v22, %v1963_v28  ;;  %v668_v25 = vpop.f32.mrb[17].mxu0  ;;  %v791_v26 = vpop.f32.mrb[17].mxu1 }
 0x181   :  { %v669_v31 = vadd.f32 %v668_v25, %v1965_v29  ;;  %v792_v32 = vadd.f32 %v791_v26, %v1967_v30  ;;  %v670_v33 = vpop.f32.mrb[18].mxu0  ;;  %v793_v34 = vpop.f32.mrb[18].mxu1  ;;  %963 = vmatprep.subr.bf16.mxu0 %v923_v19  ;;  %1004 = vmatprep.subr.bf16.mxu1 %v925_v20 }
 0x182   :  { %v872_v35 = vmax.f32 %v790_v24, 0.0  ;;  %v671_v36 = vadd.f32 %v670_v33, %v1961_v27  ;;  %v794_v37 = vadd.f32 %v793_v34, %v1963_v28  ;;  %v672_v38 = vpop.f32.mrb[19].mxu0  ;;  %v795_v39 = vpop.f32.mrb[19].mxu1  ;;  %964 = vmatpush1.bf16.msra.mxu0 %v922_v16  ;;  %1005 = vmatpush1.bf16.msra.mxu1 %v924_v17  ;;  %v870_v43 = vmax.f32 %v667_v23, 0.0 }
 0x183   :  { %v873_v40 = vmax.f32 %v792_v32, 0.0  ;;  %v673_v41 = vadd.f32 %v672_v38, %v1965_v29  ;;  %v796_v42 = vadd.f32 %v795_v39, %v1967_v30  ;;  %v871_v46 = vmax.f32 %v669_v31, 0.0 }
 0x184   :  { %v874_v44 = vmax.f32 %v671_v36, 0.0  ;;  %v876_v45 = vmax.f32 %v794_v37, 0.0 }
 0x185   :  { %v875_v47 = vmax.f32 %v673_v41, 0.0  ;;  %v877_v48 = vmax.f32 %v796_v42, 0.0 }
 0x186   :  { %v926_v49 = vpack.c.bf16 %v874_v44, %v870_v43  ;;  %v928_v50 = vpack.c.bf16 %v876_v45, %v872_v35 }
 0x187   :  { %v927_v51 = vpack.c.bf16 %v875_v47, %v871_v46  ;;  %v929_v52 = vpack.c.bf16 %v877_v48, %v873_v40  ;;  %v676_v53 = vpop.f32.mrb[20].mxu0  ;;  %v799_v54 = vpop.f32.mrb[20].mxu1 }
 0x188   :  { %v677_v55 = vadd.f32 %v676_v53, %v1961_v27  ;;  %v800_v56 = vadd.f32 %v799_v54, %v1963_v28  ;;  %v678_v57 = vpop.f32.mrb[21].mxu0  ;;  %v801_v58 = vpop.f32.mrb[21].mxu1 }
 0x189   :  { %v679_v59 = vadd.f32 %v678_v57, %v1965_v29  ;;  %v802_v60 = vadd.f32 %v801_v58, %v1967_v30  ;;  %v680_v61 = vpop.f32.mrb[22].mxu0  ;;  %v803_v62 = vpop.f32.mrb[22].mxu1  ;;  %965 = vmatprep.subr.bf16.mxu0 %v927_v51  ;;  %1006 = vmatprep.subr.bf16.mxu1 %v929_v52 }
 0x18a   :  { %v880_v63 = vmax.f32 %v800_v56, 0.0  ;;  %v681_v0 = vadd.f32 %v680_v61, %v1961_v27  ;;  %v804_v1 = vadd.f32 %v803_v62, %v1963_v28  ;;  %v682_v2 = vpop.f32.mrb[23].mxu0  ;;  %v805_v3 = vpop.f32.mrb[23].mxu1  ;;  %966 = vmatpush1.bf16.msra.mxu0 %v926_v49  ;;  %1007 = vmatpush1.bf16.msra.mxu1 %v928_v50  ;;  %v878_v7 = vmax.f32 %v677_v55, 0.0 }
 0x18b   :  { %v881_v4 = vmax.f32 %v802_v60, 0.0  ;;  %v683_v5 = vadd.f32 %v682_v2, %v1965_v29  ;;  %v806_v6 = vadd.f32 %v805_v3, %v1967_v30  ;;  %v879_v10 = vmax.f32 %v679_v59, 0.0 }
 0x18c   :  { %v882_v8 = vmax.f32 %v681_v0, 0.0  ;;  %v884_v9 = vmax.f32 %v804_v1, 0.0 }
 0x18d   :  { %v883_v11 = vmax.f32 %v683_v5, 0.0  ;;  %v885_v12 = vmax.f32 %v806_v6, 0.0 }
 0x18e   :  { %v930_v13 = vpack.c.bf16 %v882_v8, %v878_v7  ;;  %v932_v14 = vpack.c.bf16 %v884_v9, %v880_v63 }
 0x18f   :  { %v931_v15 = vpack.c.bf16 %v883_v11, %v879_v10  ;;  %v933_v16 = vpack.c.bf16 %v885_v12, %v881_v4  ;;  %v686_v17 = vpop.f32.mrb[24].mxu0  ;;  %v809_v19 = vpop.f32.mrb[24].mxu1 }
 0x190   :  { %v687_v20 = vadd.f32 %v686_v17, %v1961_v27  ;;  %v810_v21 = vadd.f32 %v809_v19, %v1963_v28  ;;  %v688_v22 = vpop.f32.mrb[25].mxu0  ;;  %v811_v23 = vpop.f32.mrb[25].mxu1 }
 0x191   :  { %v689_v24 = vadd.f32 %v688_v22, %v1965_v29  ;;  %v812_v25 = vadd.f32 %v811_v23, %v1967_v30  ;;  %v690_v26 = vpop.f32.mrb[26].mxu0  ;;  %v813_v31 = vpop.f32.mrb[26].mxu1  ;;  %967 = vmatprep.subr.bf16.mxu0 %v931_v15  ;;  %1008 = vmatprep.subr.bf16.mxu1 %v933_v16 }
 0x192   :  { %v888_v32 = vmax.f32 %v810_v21, 0.0  ;;  %v691_v33 = vadd.f32 %v690_v26, %v1961_v27  ;;  %v814_v34 = vadd.f32 %v813_v31, %v1963_v28  ;;  %v692_v35 = vpop.f32.mrb[27].mxu0  ;;  %v815_v36 = vpop.f32.mrb[27].mxu1  ;;  %968 = vmatpush1.bf16.msra.mxu0 %v930_v13  ;;  %1009 = vmatpush1.bf16.msra.mxu1 %v932_v14  ;;  %v886_v40 = vmax.f32 %v687_v20, 0.0 }
 0x193   :  { %v889_v37 = vmax.f32 %v812_v25, 0.0  ;;  %v693_v38 = vadd.f32 %v692_v35, %v1965_v29  ;;  %v816_v39 = vadd.f32 %v815_v36, %v1967_v30  ;;  %v887_v43 = vmax.f32 %v689_v24, 0.0 }
 0x194   :  { %v890_v41 = vmax.f32 %v691_v33, 0.0  ;;  %v892_v42 = vmax.f32 %v814_v34, 0.0 }
 0x195   :  { %v891_v44 = vmax.f32 %v693_v38, 0.0  ;;  %v893_v45 = vmax.f32 %v816_v39, 0.0 }
 0x196   :  { %v934_v46 = vpack.c.bf16 %v890_v41, %v886_v40  ;;  %v936_v47 = vpack.c.bf16 %v892_v42, %v888_v32 }
 0x197   :  { %v935_v48 = vpack.c.bf16 %v891_v44, %v887_v43  ;;  %v937_v49 = vpack.c.bf16 %v893_v45, %v889_v37  ;;  %v696_v50 = vpop.f32.mrb[28].mxu0  ;;  %v819_v51 = vpop.f32.mrb[28].mxu1 }
 0x198   :  { %v697_v52 = vadd.f32 %v696_v50, %v1961_v27  ;;  %v820_v53 = vadd.f32 %v819_v51, %v1963_v28  ;;  %v698_v54 = vpop.f32.mrb[29].mxu0  ;;  %v821_v55 = vpop.f32.mrb[29].mxu1  ;;  %v1708_v50 = vld [vmem:[#allocation8 + $0x8] sm:$0xff]  }
 0x199   :  { %v699_v56 = vadd.f32 %v698_v54, %v1965_v29  ;;  %v822_v57 = vadd.f32 %v821_v55, %v1967_v30  ;;  %v700_v58 = vpop.f32.mrb[30].mxu0  ;;  %v823_v59 = vpop.f32.mrb[30].mxu1  ;;  %969 = vmatprep.subr.bf16.mxu0 %v935_v48  ;;  %1010 = vmatprep.subr.bf16.mxu1 %v937_v49  ;;  %v1707_v48 = vld [vmem:[#allocation8 + $0x48] sm:$0xff]   ;;  %v1714_v54 = vld [vmem:[#allocation8 + $0x90] sm:$0xff]   ;;  %v1715_v55 = vld [vmem:[#allocation8 + $0x58] sm:$0xff]  }
 0x19a   :  { %v896_v60 = vmax.f32 %v820_v53, 0.0  ;;  %v701_v61 = vadd.f32 %v700_v58, %v1961_v27  ;;  %v824_v62 = vadd.f32 %v823_v59, %v1963_v28  ;;  %v702_v63 = vpop.f32.mrb[31].mxu0  ;;  %v825_v0 = vpop.f32.mrb[31].mxu1  ;;  %970 = vmatpush1.bf16.msra.mxu0 %v934_v46  ;;  %1011 = vmatpush1.bf16.msra.mxu1 %v936_v47  ;;  %v894_v4 = vmax.f32 %v697_v52, 0.0  ;;  %v1705_v46 = vld [vmem:[#allocation8 + $0xc0] sm:$0xff]   ;;  %v1709_v49 = vld [vmem:[#allocation8 + $0xc8] sm:$0xff]  }
 0x19b   :  { %v897_v1 = vmax.f32 %v822_v57, 0.0  ;;  %v703_v2 = vadd.f32 %v702_v63, %v1965_v29  ;;  %v826_v3 = vadd.f32 %v825_v0, %v1967_v30  ;;  %v895_v7 = vmax.f32 %v699_v56, 0.0  ;;  %v1710_v51 = vld [vmem:[#allocation8 + $0x88] sm:$0xff]   ;;  %v1711_v52 = vld [vmem:[#allocation8 + $0x50] sm:$0xff]   ;;  %v1717_v56 = vld [vmem:[#allocation8 + $0xd8] sm:$0xff]  }
 0x19c   :  { %v898_v5 = vmax.f32 %v701_v61, 0.0  ;;  %v900_v6 = vmax.f32 %v824_v62, 0.0  ;;  %v1486_v47 = vcombine.low %v1957_v18, %v1957_v18  ;;  %v1713_v53 = vld [vmem:[#allocation8 + $0xd0] sm:$0xff]   ;;  %v1716_v57 = vld [vmem:[#allocation8 + $0x18] sm:$0xff]   ;;  %v1719_v59 = vld [vmem:[#allocation8 + $0x60] sm:$0xff]  }
 0x19d   :  { %v899_v8 = vmax.f32 %v703_v2, 0.0  ;;  %v901_v9 = vmax.f32 %v826_v3, 0.0  ;;  %v1712_v18 = vld [vmem:[#allocation8 + $0x10] sm:$0xff]   ;;  %v1718_v58 = vld [vmem:[#allocation8 + $0x98] sm:$0xff]   ;;  %v1720_v61 = vld [vmem:[#allocation8 + $0x20] sm:$0xff]  }
 0x19e   :  { %v938_v10 = vpack.c.bf16 %v898_v5, %v894_v4  ;;  %v940_v11 = vpack.c.bf16 %v900_v6, %v896_v60  ;;  %v1721_v60 = vld [vmem:[#allocation8 + $0xe0] sm:$0xff]   ;;  %v1723_v63 = vld [vmem:[#allocation8 + $0x68] sm:$0xff]   ;;  %v1727_v3 = vld [vmem:[#allocation8 + $0x70] sm:$0xff]  }
 0x19f   :  { %v939_v12 = vpack.c.bf16 %v899_v8, %v895_v7  ;;  %v941_v13 = vpack.c.bf16 %v901_v9, %v897_v1  ;;  %v706_v14 = vpop.f32.mrb[32].mxu0  ;;  %v829_v15 = vpop.f32.mrb[32].mxu1  ;;  %v1722_v62 = vld [vmem:[#allocation8 + $0xa0] sm:$0xff]   ;;  %v1725_v0 = vld [vmem:[#allocation8 + $0xe8] sm:$0xff]   ;;  %v1729_v4 = vld [vmem:[#allocation8 + $0xf0] sm:$0xff]  }
 0x1a0   :  { %v707_v16 = vadd.f32 %v706_v14, %v1961_v27  ;;  %v830_v17 = vadd.f32 %v829_v15, %v1963_v28  ;;  %v708_v19 = vpop.f32.mrb[33].mxu0  ;;  %v831_v20 = vpop.f32.mrb[33].mxu1  ;;  %v1724_v1 = vld [vmem:[#allocation8 + $0x28] sm:$0xff]   ;;  %v1728_v5 = vld [vmem:[#allocation8 + $0x30] sm:$0xff]   ;;  %v1731_v7 = vld [vmem:[#allocation8 + $0x78] sm:$0xff]  }
 0x1a1   :  { %v709_v21 = vadd.f32 %v708_v19, %v1965_v29  ;;  %v832_v22 = vadd.f32 %v831_v20, %v1967_v30  ;;  %v710_v23 = vpop.f32.mrb[34].mxu0  ;;  %v833_v24 = vpop.f32.mrb[34].mxu1  ;;  %971 = vmatprep.subr.bf16.mxu0 %v939_v12  ;;  %1012 = vmatprep.subr.bf16.mxu1 %v941_v13  ;;  %v1726_v2 = vld [vmem:[#allocation8 + $0xa8] sm:$0xff]   ;;  %v1730_v6 = vld [vmem:[#allocation8 + $0xb0] sm:$0xff]   ;;  %v1733_v8 = vld [vmem:[#allocation8 + $0xf8] sm:$0xff]  }
 0x1a2   :  { %v904_v25 = vmax.f32 %v830_v17, 0.0  ;;  %v711_v26 = vadd.f32 %v710_v23, %v1961_v27  ;;  %v834_v31 = vadd.f32 %v833_v24, %v1963_v28  ;;  %v712_v32 = vpop.f32.mrb[35].mxu0  ;;  %v835_v33 = vpop.f32.mrb[35].mxu1  ;;  %972 = vmatpush1.bf16.msra.mxu0 %v938_v10  ;;  %1013 = vmatpush1.bf16.msra.mxu1 %v940_v11  ;;  %v902_v37 = vmax.f32 %v707_v16, 0.0  ;;  %v1703_v28 = vld [vmem:[#allocation8 + $0x40] sm:$0xff]   ;;  %v1732_v9 = vld [vmem:[#allocation8 + $0x38] sm:$0xff]  }
 0x1a3   :  { %v905_v34 = vmax.f32 %v832_v22, 0.0  ;;  %v713_v35 = vadd.f32 %v712_v32, %v1965_v29  ;;  %v836_v36 = vadd.f32 %v835_v33, %v1967_v30  ;;  %v903_v40 = vmax.f32 %v709_v21, 0.0  ;;  %v1704_v29 = vld [vmem:[#allocation8] sm:$0xff]   ;;  %v1734_v10 = vld [vmem:[#allocation8 + $0xb8] sm:$0xff]  }
 0x1a4   :  { %v906_v38 = vmax.f32 %v711_v26, 0.0  ;;  %v908_v39 = vmax.f32 %v834_v31, 0.0  ;;  %v1706_v30 = vld [vmem:[#allocation8 + $0x80] sm:$0xff]   ;;  %v1490_v26 = vld [vmem:[%s2063_s5] ss:$0 sm:$0xff] }
 0x1a5   :  { %v907_v41 = vmax.f32 %v713_v35, 0.0  ;;  %v909_v42 = vmax.f32 %v836_v36, 0.0 }
 0x1a6   :  { %v942_v43 = vpack.c.bf16 %v906_v38, %v902_v37  ;;  %v944_v44 = vpack.c.bf16 %v908_v39, %v904_v25 }
 0x1a7   :  { %v943_v27 = vpack.c.bf16 %v907_v41, %v903_v40  ;;  %v945_v45 = vpack.c.bf16 %v909_v42, %v905_v34 }
 0x1a9   :  { %973 = vmatprep.subr.bf16.mxu0 %v943_v27  ;;  %1014 = vmatprep.subr.bf16.mxu1 %v945_v45 }
 0x1aa   :  { %974 = vmatpush1.bf16.msra.mxu0 %v942_v43  ;;  %1015 = vmatpush1.bf16.msra.mxu1 %v944_v44 }
 0x1ab   :  { %1523 = vmatprep.subr.bf16.mxu0 %v1703_v28  ;;  %1545 = vmatprep.subr.bf16.mxu1 %v1705_v46 }
 0x1ad   :  { %990 = vmatmul.mubr.bf16.vlgmr.msra.gmra.mrb[36].mxu0 %v1486_v47  ;;  %1031 = vmatmul.mubr.bf16.vlgmr.msra.gmra.mrb[36].mxu1 %v1486_v47 }
 0x1ae   :  { %1524 = vmatpush3.bf16.msra.mxu0 %v1704_v29  ;;  %1546 = vmatpush3.bf16.msra.mxu1 %v1706_v30 }
 0x1af   :  { %1525 = vmatprep.subr.bf16.mxu0 %v1707_v48  ;;  %1547 = vmatprep.subr.bf16.mxu1 %v1709_v49 }
 0x1b2   :  { %1526 = vmatpush3.bf16.msra.mxu0 %v1708_v50  ;;  %1548 = vmatpush3.bf16.msra.mxu1 %v1710_v51 }
 0x1b3   :  { %1527 = vmatprep.subr.bf16.mxu0 %v1711_v52  ;;  %1549 = vmatprep.subr.bf16.mxu1 %v1713_v53 }
 0x1b6   :  { %1528 = vmatpush3.bf16.msra.mxu0 %v1712_v18  ;;  %1550 = vmatpush3.bf16.msra.mxu1 %v1714_v54 }
 0x1b7   :  { %1529 = vmatprep.subr.bf16.mxu0 %v1715_v55  ;;  %1551 = vmatprep.subr.bf16.mxu1 %v1717_v56 }
 0x1ba   :  { %1530 = vmatpush3.bf16.msra.mxu0 %v1716_v57  ;;  %1552 = vmatpush3.bf16.msra.mxu1 %v1718_v58 }
 0x1bb   :  { %1531 = vmatprep.subr.bf16.mxu0 %v1719_v59  ;;  %1553 = vmatprep.subr.bf16.mxu1 %v1721_v60 }
 0x1be   :  { %1532 = vmatpush3.bf16.msra.mxu0 %v1720_v61  ;;  %1554 = vmatpush3.bf16.msra.mxu1 %v1722_v62 }
 0x1bf   :  { %1533 = vmatprep.subr.bf16.mxu0 %v1723_v63  ;;  %1555 = vmatprep.subr.bf16.mxu1 %v1725_v0 }
 0x1c2   :  { %1534 = vmatpush3.bf16.msra.mxu0 %v1724_v1  ;;  %1556 = vmatpush3.bf16.msra.mxu1 %v1726_v2 }
 0x1c3   :  { %1535 = vmatprep.subr.bf16.mxu0 %v1727_v3  ;;  %1557 = vmatprep.subr.bf16.mxu1 %v1729_v4 }
 0x1c6   :  { %1536 = vmatpush3.bf16.msra.mxu0 %v1728_v5  ;;  %1558 = vmatpush3.bf16.msra.mxu1 %v1730_v6 }
 0x1c7   :  { %1537 = vmatprep.subr.bf16.mxu0 %v1731_v7  ;;  %1559 = vmatprep.subr.bf16.mxu1 %v1733_v8 }
 0x1ca   :  { %1538 = vmatpush3.bf16.msra.mxu0 %v1732_v9  ;;  %1560 = vmatpush3.bf16.msra.mxu1 %v1734_v10 }
 0x280   :  { %v991_v11 = vpop.f32.mrb[36].mxu0  ;;  %v1032_v12 = vpop.f32.mrb[36].mxu1 }
 0x281   :  { %v993_v13 = vpop.f32.mrb[37].mxu0  ;;  %v1041_v14 = vpack.c.bf16 %v1032_v12, %v1032_v12  ;;  %v1034_v15 = vpop.f32.mrb[37].mxu1  ;;  %v1039_v21 = vpack.c.bf16 %v991_v11, %v991_v11 }
 0x282   :  { %v1040_v16 = vpack.c.bf16 %v993_v13, %v993_v13  ;;  %v1042_v17 = vpack.c.bf16 %v1034_v15, %v1034_v15  ;;  %v995_v19 = vpop.f32.mrb[38].mxu0  ;;  %v1036_v20 = vpop.f32.mrb[38].mxu1 }
 0x283   :  { %v996_v22 = vpop.f32.mrb[39].mxu0  ;;  %v1037_v23 = vpop.f32.mrb[39].mxu1 }
 0x284   :  { %1338 = vmatprep.mubr.bf16.mxu0 %v1040_v16  ;;  %1378 = vmatprep.mubr.bf16.mxu1 %v1042_v17 }
 0x285   :  { %1339 = vmatmul.mubr.bf16.vlgmr.msra.gmra.mrb[40].mxu0 %v1039_v21  ;;  %1379 = vmatmul.mubr.bf16.vlgmr.msra.gmra.mrb[40].mxu1 %v1041_v14 }
 0x358   :  { %v1539_v24 = vpop.f32.mrb[40].mxu0  ;;  %v1561_v25 = vpop.f32.mrb[40].mxu1 }
 0x359   :  { %v1540_v31 = vpop.f32.mrb[41].mxu0  ;;  %v1562_v32 = vpop.f32.mrb[41].mxu1 }
 0x35a   :  { %v1541_v33 = vadd.f32 %v1540_v31, %v1539_v24  ;;  %v1542_v34 = vpop.f32.mrb[42].mxu0  ;;  %v1563_v35 = vadd.f32 %v1562_v32, %v1561_v25  ;;  %v1564_v36 = vpop.f32.mrb[42].mxu1 }
 0x35b   :  { %v1543_v37 = vpop.f32.mrb[43].mxu0  ;;  %v1565_v38 = vpop.f32.mrb[43].mxu1 }
 0x35c   :  { %v1341_v39 = vadd.f32 %v1541_v33, %v1490_v26 }
 0x35e   :  { %v1381_v40 = vadd.f32 %v1563_v35, %v1341_v39 }
 0x360   :  { %1386 = vst [vmem:[#allocation10] sm:$0xff] %v1381_v40 }
 0x361   :  { %1834 = shalt.err (!%p1831_p8)
}
 0x362   :  { %s1835_s29 = scalar_lea.hbm %s2064_s6, 128 }
 0x363   :  { %p1836_p9 = scmp.ne.s32.totalorder %s2064_s6, %s1835_s29  ;;  %p1839_p10 = scmp.lt.u32.totalorder %s1835_s29, %s2064_s6 }
 0x365   :  { %p1841_p11 = pnand %p1839_p10, %p1836_p9 }
 0x367   :  { %1844 = shalt.err (!%p1841_p11)
}
 0x368   :  { %1396 = dma.vmem_to_hbm [thread:$0]  %s1394_s26, 128, %s2064_s6, [#allocation4]  }
 0x369   :  { %1851 = dma.done.wait [#allocation4], 128  }
 0x36a   :  { %1852 = vsyncadd [#allocation4], 4294967168 }
 0x36b   :  { %1400 = vsyncpa [#allocation3], 1 }
 0x36c   :  { %1401 = vsyncpa [#allocation6], 1 }
 0x36d   :  { %1402 = vsyncpa [#allocation9], 1 }
 0x36e   :  { %1403 = vsyncpa [#allocation4], 1 }

</bundles_post_ra>
